<compile_context>
chip_gen: v5e
topology: v5e:2x2
jax: 0.10.0
libtpu: 0.0.40
codegen_flags: <defaults>
</compile_context>

<pallas_src>
import numpy as np
import jax
import jax.numpy as jnp
from jax.experimental import pallas as pl
from jax.experimental.pallas import tpu as pltpu


# ---------------------------------------------------------------------------
# Pallas kernel: full forward pass for one batch tile.
# ---------------------------------------------------------------------------
def attention_net_kernel(x_ref, w1k_ref, b1k_ref, vw2_ref, s1_ref, s2_ref, o_ref):
    x = x_ref[...]                                       # (Bt, N), possibly bf16

    # ---- get_mask(x): pairwise one-hot selector matmuls.
    # mask[b, p] = 1 iff int(x[b, j_p]) == 1 and int(x[b, j_p + i_p]) == 1.
    # Do the trunc/compare in f32 (v5e VPU has no bf16); exact for 0/1 inputs.
    xf = x.astype(jnp.float32)
    ind = (jnp.trunc(xf) == 1.0).astype(s1_ref.dtype)
    m1 = jnp.dot(ind, s1_ref[...], preferred_element_type=jnp.float32)
    m2 = jnp.dot(ind, s2_ref[...], preferred_element_type=jnp.float32)
    mask = m1 * m2                                       # (Bt, O_store), exact 0/1

    # ---- linear_layer1 + key_matrix (pre-folded): (Bt, N) @ (N, K) + (1, K)
    h = jnp.dot(x, w1k_ref[...], preferred_element_type=jnp.float32) + b1k_ref[...]

    # ---- softmax over dim=1 (key dimension); exact EUP reciprocal (free,
    # kernel is HBM-bound) so the b2-into-vw2 fold is numerically clean.
    h = h - jnp.max(h, axis=1, keepdims=True)
    e = jnp.exp(h)
    p = e * pl.reciprocal(jnp.sum(e, axis=1, keepdims=True), approx=False)

    # ---- value_matrix + linear_layer2 (pre-folded, b2 folded into vw2):
    #      (Bt, K) @ (K, O_store)
    out = jnp.dot(p.astype(vw2_ref.dtype), vw2_ref[...],
                  preferred_element_type=jnp.float32)

    # ---- elementwise multiply by the pairwise mask; store (default bf16).
    o_ref[...] = (out * mask).astype(o_ref.dtype)


# ---------------------------------------------------------------------------
# Wrapper
# ---------------------------------------------------------------------------
def attention_net_forward(x, params, sel1, sel2, *, block_b=4096,
                          use_bf16=True, out_dtype=jnp.bfloat16,
                          pad_output_lanes=False, return_padded=False):
    """Forward pass of Attention_Net.

    params = (w1, b1, key_matrix, value_matrix, w2, b2); x is (B, N) with 0/1
    item indicators (as the original get_mask logic implies).
    """
    w1, b1, key_m, val_m, w2, b2 = params
    B, N = x.shape
    K = key_m.shape[1]
    O = w2.shape[1]

    # ---- algebraic folding of the matmul chain (once, outside the kernel):
    # (x@w1 + b1)@key = x@(w1@key) + (b1@key)
    # softmax rows sum to 1  =>  p@(val@w2) + b2 == p@(val@w2 + ones(K,1)@b2)
    w1k = jnp.dot(w1, key_m)                                    # (N, K)
    b1k = jnp.dot(b1, key_m)                                    # (1, K)
    vw2 = jnp.dot(val_m, w2) + jnp.ones((K, 1), jnp.float32) * b2   # (K, O)

    # ---- output lane layout: compact (last dim == O, legal since it equals
    # the full array dim) by default; optional 128-lane padding for full vst.
    if pad_output_lanes:
        o_store = ((O + 127) // 128) * 128
        vw2 = jnp.pad(vw2, ((0, 0), (0, o_store - O)))
        s1 = jnp.pad(sel1, ((0, 0), (0, o_store - O)))
        s2 = jnp.pad(sel2, ((0, 0), (0, o_store - O)))
    else:
        o_store = O
        s1, s2 = sel1, sel2

    # ---- batch tiling: 1-D grid over B. Sublane multiple is 16 for bf16
    # (2 rows/sublane packing), 8 for f32.
    sub = 16 if use_bf16 else 8
    rup = lambda v, m: ((v + m - 1) // m) * m
    b_rounded = rup(B, sub)
    blk = min(rup(block_b, sub), b_rounded)
    # Keep >=2 grid steps when the batch allows it so both TensorCores on
    # v7x get work from the "parallel" axis (negligible cost on v5e/v6e).
    if b_rounded >= 2 * sub:
        blk = min(blk, rup(pl.cdiv(b_rounded, 2), sub))
    blk = max(sub, blk)
    nb = pl.cdiv(b_rounded, blk)
    b_pad = nb * blk
    x_p = jnp.pad(x, ((0, b_pad - B), (0, 0)))

    # ---- dtypes: bf16 MXU operands by default; accumulation stays f32.
    in_dtype = jnp.bfloat16 if use_bf16 else jnp.float32
    x_p = x_p.astype(in_dtype)
    w1k = w1k.astype(in_dtype)
    vw2 = vw2.astype(in_dtype)
    s1 = s1.astype(in_dtype)
    s2 = s2.astype(in_dtype)
    b1k = b1k.astype(jnp.float32)

    xsz = jnp.dtype(in_dtype).itemsize
    osz = jnp.dtype(out_dtype).itemsize
    weight_bytes = (w1k.size + vw2.size + s1.size + s2.size) * xsz + b1k.size * 4

    cost = pl.CostEstimate(
        flops=2 * b_pad * N * K                      # x @ w1k
              + 2 * b_pad * K * o_store              # p @ vw2
              + 2 * (2 * b_pad * N * o_store)        # two selector matmuls
              + b_pad * (6 * K + 2 * o_store),       # elementwise
        transcendentals=b_pad * (K + 1),
        bytes_accessed=b_pad * N * xsz + weight_bytes + b_pad * o_store * osz,
    )

    # Scoped-VMEM estimate: double-buffered tiles + resident operands +
    # f32 intermediates + slack (well under even v7x's 64 MiB).
    est_vmem = int(2 * (blk * N * xsz + blk * o_store * osz)
                   + 2 * weight_bytes
                   + blk * (4 * K + 5 * o_store) * 4
                   + (4 << 20))
    vmem_limit = max(32 << 20, min(est_vmem, 64 << 20))

    out = pl.pallas_call(
        attention_net_kernel,
        out_shape=jax.ShapeDtypeStruct((b_pad, o_store), out_dtype),
        grid=(nb,),
        in_specs=[
            pl.BlockSpec((blk, N), lambda i: (i, 0)),          # x tile
            pl.BlockSpec((N, K), lambda i: (0, 0)),            # w1 @ key (full)
            pl.BlockSpec((1, K), lambda i: (0, 0)),            # b1 @ key (full)
            pl.BlockSpec((K, o_store), lambda i: (0, 0)),      # val@w2 (+b2) (full)
            pl.BlockSpec((N, o_store), lambda i: (0, 0)),      # selector 1 (full)
            pl.BlockSpec((N, o_store), lambda i: (0, 0)),      # selector 2 (full)
        ],
        out_specs=pl.BlockSpec((blk, o_store), lambda i: (i, 0)),
        compiler_params=pltpu.CompilerParams(
            dimension_semantics=("parallel",),
            vmem_limit_bytes=vmem_limit),
        cost_estimate=cost,
    )(x_p, w1k, b1k, vw2, s1, s2)

    if return_padded:
        return out            # (b_pad, o_store): index lazily downstream
    return out[:B, :O]        # compact path: row slice only (O == o_store)


def build_pair_selectors(item_number):
    """One-hot selectors replicating the (offset i, start j) pair ordering of
    get_mask: for i in 1..N-1, for j in 0..N-i-1 -> pair (j, j+i)."""
    pairs = []
    for i in range(1, item_number):
        for j in range(item_number - i):
            pairs.append((j, j + i))
    O = len(pairs)
    s1 = np.zeros((item_number, O), dtype=np.float32)
    s2 = np.zeros((item_number, O), dtype=np.float32)
    for p, (a, b) in enumerate(pairs):
        s1[a, p] = 1.0
        s2[b, p] = 1.0
    return jnp.asarray(s1), jnp.asarray(s2)


def init_params(rng, item_number, query_dim=5, key_dim=10, feature_dim=8):
    output_dim = item_number * (item_number - 1) // 2
    k1, k2, k3, k4, k5, k6 = jax.random.split(rng, 6)
    # linear_layer1: Linear(item_number, query_dim)  -> stored (in, out)
    w1 = jax.random.normal(k1, (item_number, query_dim), jnp.float32) * 0.1
    b1 = jax.random.normal(k2, (1, query_dim), jnp.float32) * 0.1
    # key_matrix (query_dim, key_dim), value_matrix (key_dim, feature_dim)
    key_m = jax.random.normal(k3, (query_dim, key_dim), jnp.float32)
    val_m = jax.random.normal(k4, (key_dim, feature_dim), jnp.float32)
    # linear_layer2: Linear(feature_dim, output_dim)
    w2 = jax.random.normal(k5, (feature_dim, output_dim), jnp.float32) * 0.1
    b2 = jax.random.normal(k6, (1, output_dim), jnp.float32) * 0.1
    return (w1, b1, key_m, val_m, w2, b2)


def reference_forward(x, params, sel1, sel2):
    """Pure-JAX reference mirroring the PyTorch forward (unfolded, f32)."""
    w1, b1, key_m, val_m, w2, b2 = params
    ind = (jnp.trunc(x) == 1.0).astype(jnp.float32)
    mask = (ind @ sel1) * (ind @ sel2)
    h = x @ w1 + b1
    h = h @ key_m
    h = jax.nn.softmax(h, axis=1)
    h = h @ val_m
    h = h @ w2 + b2
    return h * mask


if __name__ == "__main__":
    item_number = 8          # len(item_list)
    batch = 2
    output_dim = item_number * (item_number - 1) // 2   # 28

    root = jax.random.PRNGKey(0)
    k_params, k_x = jax.random.split(root)

    params = init_params(k_params, item_number)
    sel1, sel2 = build_pair_selectors(item_number)

    # x: (B, N) 0/1 item-indicator vectors, as the mask logic implies.
    x = jax.random.bernoulli(k_x, p=0.6, shape=(batch, item_number)).astype(jnp.float32)

    out = attention_net_forward(x, params, sel1, sel2)
    out = jax.block_until_ready(out)

    ref = reference_forward(x, params, sel1, sel2)
    assert out.shape == (batch, output_dim)
    # Tolerance accounts for bf16 MXU operands, bf16 output and the
    # weight-fold reassociation (softmax reciprocal itself is exact).
    np.testing.assert_allclose(np.asarray(out, dtype=np.float32),
                               np.asarray(ref), rtol=2e-2, atol=2e-2)

    print("KERNEL_OK")
</pallas_src>

<mosaic_0001>
module attributes {stable_mosaic.version = 11 : i64} {
  func.func @attention_net_kernel(%arg0: i32, %arg1: memref<16x8xbf16, #tpu.memory_space<vmem>>, %arg2: memref<8x10xbf16, #tpu.memory_space<vmem>>, %arg3: memref<1x10xf32, #tpu.memory_space<vmem>>, %arg4: memref<10x28xbf16, #tpu.memory_space<vmem>>, %arg5: memref<8x28xbf16, #tpu.memory_space<vmem>>, %arg6: memref<8x28xbf16, #tpu.memory_space<vmem>>, %arg7: memref<16x28xbf16, #tpu.memory_space<vmem>>) attributes {dimension_semantics = [#tpu.dimension_semantics<parallel>], iteration_bounds = array<i64: 1>, scalar_prefetch = 0 : i64, scratch_operands = 0 : i64, tpu.core_type = #tpu.core_type<tc>, window_params = [{transform_indices = @transform_0, window_bounds = array<i64: 16, 8>}, {pipeline_mode = #tpu.pipeline_mode<synchronous>, transform_indices = @transform_1, window_bounds = array<i64: 8, 10>}, {pipeline_mode = #tpu.pipeline_mode<synchronous>, transform_indices = @transform_2, window_bounds = array<i64: 1, 10>}, {pipeline_mode = #tpu.pipeline_mode<synchronous>, transform_indices = @transform_3, window_bounds = array<i64: 10, 28>}, {pipeline_mode = #tpu.pipeline_mode<synchronous>, transform_indices = @transform_4, window_bounds = array<i64: 8, 28>}, {pipeline_mode = #tpu.pipeline_mode<synchronous>, transform_indices = @transform_5, window_bounds = array<i64: 8, 28>}, {transform_indices = @transform_6, window_bounds = array<i64: 16, 28>}]} {
    %c0 = arith.constant 0 : index
    %c0_0 = arith.constant 0 : index
    %0 = vector.load %arg1[%c0, %c0_0] : memref<16x8xbf16, #tpu.memory_space<vmem>>, vector<16x8xbf16>
    %1 = arith.extf %0 : vector<16x8xbf16> to vector<16x8xf32>
    %cst = arith.constant 0.000000e+00 : f32
    %2 = vector.broadcast %cst : f32 to vector<16x8xf32>
    %3 = arith.cmpf olt, %1, %2 : vector<16x8xf32>
    %4 = math.ceil %1 : vector<16x8xf32>
    %5 = math.floor %1 : vector<16x8xf32>
    %6 = arith.select %3, %4, %5 : vector<16x8xi1>, vector<16x8xf32>
    %cst_1 = arith.constant 1.000000e+00 : f32
    %7 = vector.broadcast %cst_1 : f32 to vector<16x8xf32>
    %8 = arith.cmpf oeq, %6, %7 : vector<16x8xf32>
    %9 = arith.extui %8 : vector<16x8xi1> to vector<16x8xi32>
    %10 = arith.sitofp %9 : vector<16x8xi32> to vector<16x8xf32>
    %11 = arith.truncf %10 : vector<16x8xf32> to vector<16x8xbf16>
    %c0_2 = arith.constant 0 : index
    %c0_3 = arith.constant 0 : index
    %12 = vector.load %arg5[%c0_2, %c0_3] : memref<8x28xbf16, #tpu.memory_space<vmem>>, vector<8x28xbf16>
    %cst_4 = arith.constant dense<0.000000e+00> : vector<16x28xf32>
    %13 = tpu.matmul %11, %12, %cst_4 {dimension_numbers = #tpu.dot_dimension_numbers<[1], [0], [0], [1], [0, 0, 1, 1], [], []>} : vector<16x8xbf16>, vector<8x28xbf16>, vector<16x28xf32> -> vector<16x28xf32>
    %c0_5 = arith.constant 0 : index
    %c0_6 = arith.constant 0 : index
    %14 = vector.load %arg6[%c0_5, %c0_6] : memref<8x28xbf16, #tpu.memory_space<vmem>>, vector<8x28xbf16>
    %cst_7 = arith.constant dense<0.000000e+00> : vector<16x28xf32>
    %15 = tpu.matmul %11, %14, %cst_7 {dimension_numbers = #tpu.dot_dimension_numbers<[1], [0], [0], [1], [0, 0, 1, 1], [], []>} : vector<16x8xbf16>, vector<8x28xbf16>, vector<16x28xf32> -> vector<16x28xf32>
    %16 = arith.mulf %13, %15 : vector<16x28xf32>
    %c0_8 = arith.constant 0 : index
    %c0_9 = arith.constant 0 : index
    %17 = vector.load %arg2[%c0_8, %c0_9] : memref<8x10xbf16, #tpu.memory_space<vmem>>, vector<8x10xbf16>
    %cst_10 = arith.constant dense<0.000000e+00> : vector<16x10xf32>
    %18 = tpu.matmul %0, %17, %cst_10 {dimension_numbers = #tpu.dot_dimension_numbers<[1], [0], [0], [1], [0, 0, 1, 1], [], []>} : vector<16x8xbf16>, vector<8x10xbf16>, vector<16x10xf32> -> vector<16x10xf32>
    %c0_11 = arith.constant 0 : index
    %c0_12 = arith.constant 0 : index
    %19 = vector.load %arg3[%c0_11, %c0_12] : memref<1x10xf32, #tpu.memory_space<vmem>>, vector<1x10xf32>
    %20 = vector.broadcast %19 : vector<1x10xf32> to vector<16x10xf32>
    %21 = arith.addf %18, %20 : vector<16x10xf32>
    %cst_13 = arith.constant dense<0xFF800000> : vector<16xf32>
    %22 = vector.multi_reduction <maximumf>, %21, %cst_13 [1] : vector<16x10xf32> to vector<16xf32>
    %23 = vector.shape_cast %22 : vector<16xf32> to vector<16x1xf32>
    %24 = vector.broadcast %23 : vector<16x1xf32> to vector<16x10xf32>
    %25 = arith.subf %21, %24 : vector<16x10xf32>
    %26 = math.exp %25 : vector<16x10xf32>
    %cst_14 = arith.constant dense<0.000000e+00> : vector<16xf32>
    %27 = vector.multi_reduction <add>, %26, %cst_14 [1] : vector<16x10xf32> to vector<16xf32>
    %28 = vector.shape_cast %27 : vector<16xf32> to vector<16x1xf32>
    %29 = tpu.reciprocal %28 : vector<16x1xf32> -> vector<16x1xf32>
    %30 = vector.broadcast %29 : vector<16x1xf32> to vector<16x10xf32>
    %31 = arith.mulf %26, %30 : vector<16x10xf32>
    %32 = arith.truncf %31 : vector<16x10xf32> to vector<16x10xbf16>
    %c0_15 = arith.constant 0 : index
    %c0_16 = arith.constant 0 : index
    %33 = vector.load %arg4[%c0_15, %c0_16] : memref<10x28xbf16, #tpu.memory_space<vmem>>, vector<10x28xbf16>
    %cst_17 = arith.constant dense<0.000000e+00> : vector<16x28xf32>
    %34 = tpu.matmul %32, %33, %cst_17 {dimension_numbers = #tpu.dot_dimension_numbers<[1], [0], [0], [1], [0, 0, 1, 1], [], []>} : vector<16x10xbf16>, vector<10x28xbf16>, vector<16x28xf32> -> vector<16x28xf32>
    %35 = arith.mulf %34, %16 : vector<16x28xf32>
    %36 = arith.truncf %35 : vector<16x28xf32> to vector<16x28xbf16>
    %c0_18 = arith.constant 0 : index
    %c0_19 = arith.constant 0 : index
    %37 = vector.load %arg7[%c0_18, %c0_19] : memref<16x28xbf16, #tpu.memory_space<vmem>>, vector<16x28xbf16>
    tpu.vector_store %arg7[%c0_18, %c0_19], %36 {strides = array<i32>} : memref<16x28xbf16, #tpu.memory_space<vmem>>, vector<16x28xbf16>,
    return
  }
  func.func @transform_0(%arg0: i32) -> (i32, i32) {
    %c0_i32 = arith.constant 0 : i32
    %c0_i32_0 = arith.constant 0 : i32
    return %arg0, %c0_i32 : i32, i32
  }
  func.func @transform_1(%arg0: i32) -> (i32, i32) {
    %c0_i32 = arith.constant 0 : i32
    %c0_i32_0 = arith.constant 0 : i32
    %c0_i32_1 = arith.constant 0 : i32
    return %c0_i32, %c0_i32_0 : i32, i32
  }
  func.func @transform_2(%arg0: i32) -> (i32, i32) {
    %c0_i32 = arith.constant 0 : i32
    %c0_i32_0 = arith.constant 0 : i32
    %c0_i32_1 = arith.constant 0 : i32
    return %c0_i32, %c0_i32_0 : i32, i32
  }
  func.func @transform_3(%arg0: i32) -> (i32, i32) {
    %c0_i32 = arith.constant 0 : i32
    %c0_i32_0 = arith.constant 0 : i32
    %c0_i32_1 = arith.constant 0 : i32
    return %c0_i32, %c0_i32_0 : i32, i32
  }
  func.func @transform_4(%arg0: i32) -> (i32, i32) {
    %c0_i32 = arith.constant 0 : i32
    %c0_i32_0 = arith.constant 0 : i32
    %c0_i32_1 = arith.constant 0 : i32
    return %c0_i32, %c0_i32_0 : i32, i32
  }
  func.func @transform_5(%arg0: i32) -> (i32, i32) {
    %c0_i32 = arith.constant 0 : i32
    %c0_i32_0 = arith.constant 0 : i32
    %c0_i32_1 = arith.constant 0 : i32
    return %c0_i32, %c0_i32_0 : i32, i32
  }
  func.func @transform_6(%arg0: i32) -> (i32, i32) {
    %c0_i32 = arith.constant 0 : i32
    %c0_i32_0 = arith.constant 0 : i32
    return %arg0, %c0_i32 : i32, i32
  }
}

</mosaic_0001>

<bundles_post_ra>
// kernel: tpu_custom_call.1
= control target key start
LH: loop header
LB: loop body
LE: loop exit
PB: predicated region body
PF: predicated region fallthrough
CT: control target
= control target key end

     0   :  { %11 = vsyncpa [#allocation3], 0  ;;  %s446_s0 = inlined_call_operand.vmem [shape: bf16[16,8], index: 0, kind: input, shape index: {}]   ;;  %s447_s1 = inlined_call_operand.vmem [shape: bf16[8,10], index: 1, kind: input, shape index: {}]   ;;  %s448_s2 = inlined_call_operand.hbm [shape: f32[1,10], index: 2, kind: input, shape index: {}]   ;;  %s449_s3 = inlined_call_operand.vmem [shape: bf16[10,28], index: 3, kind: input, shape index: {}]   ;;  %s450_s4 = inlined_call_operand.hbm [shape: bf16[8,28], index: 4, kind: input, shape index: {}]   ;;  %s451_s5 = inlined_call_operand.vmem [shape: bf16[8,28], index: 5, kind: input, shape index: {}]   ;;  %s452_s6 = inlined_call_operand.hbm [shape: bf16[16,28], index: 6, kind: output, shape index: {}]  }
   0x1   :  { %12 = vsyncpa [#allocation6], 0 }
   0x2   :  { %13 = vsyncpa [#allocation4], 0  ;;  %s23_s23 = sshll.u32 %s448_s2, 4  ;;  %s359_s24 = smov [#allocation2]   ;;  %s24_s23 = int_to_ptr.hbm [resolvable:$true] %s23_s23 }
   0x3   :  { %s25_s25 = sshll.u32 %s359_s24, 4  ;;  %s36_s28 = sshll.u32 %s450_s4, 4  ;;  %s26_s25 = int_to_ptr.vmem [resolvable:$true] %s25_s25  ;;  %s37_s28 = int_to_ptr.hbm [resolvable:$true] %s36_s28 }
   0x4   :  { %28 = dma.hbm_to_vmem [thread:$0]  %s24_s23, 16, %s26_s25, [#allocation3]  }
   0x5   :  { %s360_s29 = smov [#allocation5]  }
   0x6   :  { %s38_s30 = sshll.u32 %s360_s29, 4  ;;  %s39_s30 = int_to_ptr.vmem [resolvable:$true] %s38_s30 }
   0x7   :  { %41 = dma.hbm_to_vmem [thread:$0]  %s37_s28, 64, %s39_s30, [#allocation6]  }
   0x8   :  { %353 = dma.done.wait [#allocation3], 16  }
   0x9   :  { %354 = vsyncadd [#allocation3], 4294967280 }
   0xa   :  { %355 = dma.done.wait [#allocation6], 64  }
   0xb   :  { %356 = vsyncadd [#allocation6], 4294967232  ;;  %vm77_vm0 = vcmask 1043456   ;;  %v115_v0 = vld [vmem:[%s447_s1] sm:$0xf]  ;;  %vm73_vm1 = vcmask 64512  }
   0xc   :  { %v129_v1 = vsel %vm77_vm0, %v115_v0, 0  ;;  %v264_v2 = vld [vmem:[%s446_s0] sm:$0xff]  ;;  %v272_v3 = vld [vmem:[#allocation2] ss:$0 sm:$0xff]  ;;  %vm145_vm2 = vcmask 80896   ;;  %v361_v35 = vmov 0.0  }
   0xd   :  { %138 = vmatpush.bf16.msra.mxu2 %v129_v1  ;;  %v53_v20 = vld [vmem:[%s446_s0] sm:$0xff]   ;;  %v72_v27 = vld [vmem:[#allocation5] sm:$0xf]  ;;  %vm205_vm7 = vcmask 1044480   ;;  %s236_s17 = sshll.u32 %s452_s6, 4  ;;  %s363_s18 = smov 64   ;;  %s237_s17 = int_to_ptr.hbm [resolvable:$true] %s236_s17 }
   0xe   :  { %v55_v21 = vunpack.c.l.bf16 %v53_v20  ;;  %v56_v22 = vunpack.c.h.bf16 %v53_v20  ;;  %v95_v28 = vld [vmem:[%s451_s5] sm:$0xf]  ;;  %v79_v31 = vsel %vm77_vm0, %v72_v27, 0  ;;  %v265_v34 = vld [vmem:[%s449_s3] sm:$0x10]  ;;  %s364_s19 = smov 4  }
   0xf   :  { %v97_v32 = vsel %vm77_vm0, %v95_v28, 0  ;;  %88 = vmatpush.bf16.msra.mxu0 %v79_v31  ;;  %v261_v33 = vld [vmem:[%s449_s3] sm:$0xf]  ;;  %vm227_vm0 = vcmask 224256   ;;  %s362_s3 = smov [#allocation7]  }
  0x10   :  { %258 = vmatmul.msk.bf16.vlgmr.msra.gmra.mxu2 %vm73_vm1, %v264_v2  ;;  %v59_v23 = vceil.f32 %v55_v21  ;;  %v60_v24 = vceil.f32 %v56_v22  ;;  %v61_v25 = vfloor.f32 %v55_v21  ;;  %v62_v26 = vfloor.f32 %v56_v22  ;;  %106 = vmatpush.bf16.msra.mxu1 %v97_v32  ;;  %s234_s5 = sshll.u32 %s362_s3, 4  ;;  %s235_s5 = int_to_ptr.vmem [resolvable:$true] %s234_s5 }
  0x11   :  { %vm57_vm3 = vcmp.lt.f32.partialorder %v55_v21, 0.0  ;;  %vm58_vm4 = vcmp.lt.f32.partialorder %v56_v22, 0.0  ;;  %v262_v38 = vor.u32 %v265_v34, %v261_v33 }
  0x12   :  { %v63_v29 = vsel %vm57_vm3, %v59_v23, %v61_v25  ;;  %v64_v30 = vsel %vm58_vm4, %v60_v24, %v62_v26 }
  0x13   :  { %vm65_vm5 = vcmp.eq.f32.partialorder %v63_v29, 1.0  ;;  %vm66_vm6 = vcmp.eq.f32.partialorder %v64_v30, 1.0  ;;  %v207_v40 = vsel %vm205_vm7, %v262_v38, 0 }
  0x14   :  { %v250_v36 = vsel %vm65_vm5, 1.0, %v361_v35  ;;  %v251_v37 = vsel %vm66_vm6, 1.0, %v361_v35  ;;  %216 = vmatpush.bf16.msra.mxu3 %v207_v40 }
  0x15   :  { %v71_v39 = vpack.c.bf16 %v251_v37, %v250_v36 }
  0x17   :  { %252 = vmatmul.msk.bf16.vlgmr.msra.gmra.mxu0 %vm73_vm1, %v71_v39  ;;  %253 = vmatmul.msk.bf16.vlgmr.msra.gmra.mxu1 %vm73_vm1, %v71_v39 }
  0x93   :  { %v140_v4 = vpop.f32.mrf.mxu2 }
  0x94   :  { %v141_v5 = vadd.f32 %v272_v3, %v140_v4  ;;  %v90_v2 = vpop.f32.mrf.mxu0 }
  0x96   :  { %v146_v6 = vsel %vm145_vm2, %v141_v5, -inf }
  0x97   :  { %147 = vmax.xlane.f32.xlu0 %v146_v6 }
  0x9b   :  { %v142_v7 = vpop.f32.mrf.mxu2 }
  0x9c   :  { %v143_v8 = vadd.f32 %v272_v3, %v142_v7  ;;  %v108_v3 = vpop.f32.mrf.mxu1 }
  0x9d   :  { %v113_v4 = vmul.f32 %v108_v3, %v90_v2 }
  0x9e   :  { %v149_v9 = vsel %vm145_vm2, %v143_v8, -inf }
  0x9f   :  { %150 = vmax.xlane.f32.xlu0 %v149_v9 }
  0xa4   :  { %v110_v9 = vpop.f32.mrf.mxu1 }
 0x10a   :  { %v148_v10 = vpop.xlane.xlu0 %147 }
 0x10b   :  { %v152_v11 = vsub.f32 %v141_v5, %v148_v10 }
 0x10d   :  { %v154_v12 = vmul.f32 1.442695, %v152_v11 }
 0x10f   :  { %273 = vpow2.f32 %v154_v12 }
 0x112   :  { %v151_v13 = vpop.xlane.xlu0 %150 }
 0x113   :  { %v153_v14 = vsub.f32 %v143_v8, %v151_v13  ;;  %v92_v8 = vpop.f32.mrf.mxu0 }
 0x114   :  { %v114_v10 = vmul.f32 %v110_v9, %v92_v8 }
 0x115   :  { %v416_v15 = vpop.eup %273  ;;  %v156_v16 = vmul.f32 1.442695, %v153_v14 }
 0x116   :  { %v158_v17 = vsel %vm145_vm2, %v416_v15, 0.0 }
 0x117   :  { %275 = vpow2.f32 %v156_v16  ;;  %159 = vadd.xlane.f32.xlu1 %v158_v17 }
 0x11d   :  { %v420_v18 = vpop.eup %275 }
 0x11e   :  { %v161_v19 = vsel %vm145_vm2, %v420_v18, 0.0 }
 0x11f   :  { %162 = vadd.xlane.f32.xlu1 %v161_v19 }
 0x18a   :  { %v160_v41 = vpop.xlane.xlu1 %159 }
 0x18b   :  { %277 = vrcp.f32 %v160_v41  ;;  %v175_v50 = vand.u32 2147483648, %v160_v41  ;;  %vm169_vm9 = vweird.f32 %v160_v41  ;;  %v173_v51 = vand.u32 2147483647, %v160_v41 }
 0x18d   :  { %v176_v57 = vor.u32 1.1754944e-38, %v175_v50  ;;  %vm174_vm12 = vcmp.eq.f32.partialorder %v173_v51, 8.507059e+37 }
 0x191   :  { %v278_v42 = vpop.eup %277 }
 0x192   :  { %v165_v43 = vmul.f32 %v278_v42, %v160_v41  ;;  %v163_v44 = vpop.xlane.xlu1 %162  ;;  %vm170_vm8 = vweird.f32 %v278_v42 }
 0x193   :  { %279 = vrcp.f32 %v163_v44  ;;  %vm171_vm10 = vmor %vm169_vm9, %vm170_vm8  ;;  %v189_v53 = vand.u32 2147483648, %v163_v44  ;;  %v187_v55 = vand.u32 2147483647, %v163_v44  ;;  %vm183_vm13 = vweird.f32 %v163_v44 }
 0x194   :  { %v166_v45 = vsub.f32 1.0, %v165_v43 }
 0x195   :  { %v190_v59 = vor.u32 1.1754944e-38, %v189_v53  ;;  %vm188_vm15 = vcmp.eq.f32.partialorder %v187_v55, 8.507059e+37 }
 0x196   :  { %v167_v46 = vmul.f32 %v278_v42, %v166_v45 }
 0x198   :  { %v168_v48 = vadd.f32 %v278_v42, %v167_v46 }
 0x199   :  { %v280_v47 = vpop.eup %279 }
 0x19a   :  { %v179_v49 = vmul.f32 %v280_v47, %v163_v44  ;;  %vm184_vm11 = vweird.f32 %v280_v47  ;;  %v172_v56 = vsel %vm171_vm10, %v278_v42, %v168_v48 }
 0x19b   :  { %vm185_vm14 = vmor %vm183_vm13, %vm184_vm11  ;;  %v177_v60 = vsel %vm174_vm12, %v176_v57, %v172_v56 }
 0x19c   :  { %v180_v52 = vsub.f32 1.0, %v179_v49  ;;  %v192_v63 = vmul.f32 %v416_v15, %v177_v60 }
 0x19e   :  { %v181_v54 = vmul.f32 %v280_v47, %v180_v52 }
 0x1a0   :  { %v182_v58 = vadd.f32 %v280_v47, %v181_v54 }
 0x1a2   :  { %v186_v61 = vsel %vm185_vm14, %v280_v47, %v182_v58 }
 0x1a3   :  { %v191_v62 = vsel %vm188_vm15, %v190_v59, %v186_v61 }
 0x1a4   :  { %v193_v0 = vmul.f32 %v420_v18, %v191_v62 }
 0x1a6   :  { %v194_v1 = vpack.c.bf16 %v193_v0, %v192_v63 }
 0x1a8   :  { %263 = vmatmul.msk.bf16.vlgmr.msra.gmra.mxu3 %vm145_vm2, %v194_v1 }
 0x22b   :  { %v218_v5 = vpop.f32.mrf.mxu3 }
 0x22c   :  { %v223_v6 = vmul.f32 %v218_v5, %v113_v4 }
 0x22e   :  { %v225_v7 = vpack.c.bf16 %v223_v6, %v223_v6 }
 0x230   :  { %228 = vst.msk [vmem:[#allocation7] sm:$0xf] %vm227_vm0, %v225_v7 }
 0x233   :  { %v220_v11 = vpop.f32.mrf.mxu3 }
 0x234   :  { %v224_v12 = vmul.f32 %v220_v11, %v114_v10 }
 0x236   :  { %v226_v13 = vpack.c.bf16 %v224_v12, %v224_v12 }
 0x238   :  { %229 = vst.msk [vmem:[#allocation7 + $0x4] sm:$0xf] %vm227_vm0, %v226_v13 }
 0x239   :  { %242 = dma.vmem_to_hbm [thread:$0]  %s235_s5, 128, %s237_s17, [#allocation4], %s363_s18, %s363_s18, %s364_s19  }
 0x23a   :  { %357 = dma.done.wait [#allocation4], 128  }
 0x23b   :  { %358 = vsyncadd [#allocation4], 4294967168 }
 0x23c   :  { %247 = vsyncpa [#allocation3], 1 }
 0x23d   :  { %248 = vsyncpa [#allocation6], 1 }
 0x23e   :  { %249 = vsyncpa [#allocation4], 1 }

</bundles_post_ra>
